<compile_context>
chip_gen: v5e
topology: v5e:2x2
jax: 0.10.0
libtpu: 0.0.40
codegen_flags: <defaults>
</compile_context>

<pallas_src>
import jax
import jax.numpy as jnp
from jax.experimental import pallas as pl
from jax.experimental.pallas import tpu as pltpu


# Config property of the module (no compute involved).
IDENTITY_MAP_CONFIG = {"mm_projector_type": "identity"}


# ---------------------------------------------------------------------------
# Production path: IdentityMap.forward(x, *args, **kwargs) -> x.  Zero-copy.
# ---------------------------------------------------------------------------
def identity_map(x: jax.Array, *args, **kwargs) -> jax.Array:
    return x


# ---------------------------------------------------------------------------
# Pallas copy kernels (benchmark / explicit-materialization only).
# ---------------------------------------------------------------------------
def _copy_kernel(x_ref, o_ref):
    # Pure pass-through: copy the current VMEM tile to the output tile.
    o_ref[...] = x_ref[...]


def _dma_copy_kernel(x_hbm, o_hbm, sem):
    # DMA-only HBM->HBM copy: no VMEM round trip, no vector slots used.
    cp = pltpu.make_async_copy(x_hbm, o_hbm, sem)
    cp.start()
    cp.wait()


def _vmem_budget_bytes() -> int:
    try:
        return int(pltpu.get_tpu_info().vmem_capacity_bytes)
    except Exception:
        return 64 * 1024 * 1024  # conservative (v7x per-TC figure)


def _tile_and_limit_bytes():
    vmem = _vmem_budget_bytes()
    if vmem >= 100 * 1024 * 1024:
        # v5e / v6e: 128 MiB VMEM -> 8 MiB tiles, 40 MiB scoped limit
        # (v5e's 16 MiB default scoped limit makes the explicit value mandatory).
        return 8 * 1024 * 1024, 40 * 1024 * 1024
    # v7x: 64 MiB/TC -> 4 MiB tiles, 32 MiB limit (4x tile << VMEM, keeps
    # double-buffering healthy on both cores).
    return 4 * 1024 * 1024, 32 * 1024 * 1024


def _choose_lane(total: int):
    # Largest lane-dense width (multiple of 128) that divides the element count.
    for lane in (2048, 1024, 512, 256, 128):
        if total % lane == 0:
            return lane
    return None


def _choose_tile_rows(rows: int, lane: int, itemsize: int,
                      tile_bytes: int, align: int) -> int:
    target = max(align, tile_bytes // (lane * itemsize))
    target = (target // align) * align
    if rows <= target:
        # Small input: if it can still be split into >= 2 aligned blocks, do so,
        # so dimension_semantics=("parallel",) can shard across v7x's two TCs.
        if rows >= 2 * align:
            return max(align, ((rows // 2) // align) * align)
        return rows  # single full-extent block (always legal)
    return target


def identity_map_pallas(x: jax.Array, *args, donate: bool = False, **kwargs) -> jax.Array:
    """Explicit Pallas copy of x (tiled HBM->VMEM->HBM, near HBM roofline)."""
    orig_shape = x.shape
    total = 1
    for d in orig_shape:
        total *= int(d)
    if total == 0:
        return x

    lane = _choose_lane(total)
    if lane is None:
        # Element count not a multiple of 128: identity semantics make the
        # zero-copy path the right answer (no masked / giant-block copy).
        return x

    itemsize = jnp.dtype(x.dtype).itemsize
    rows = total // lane
    tile_bytes, vmem_limit = _tile_and_limit_bytes()
    # Sublane packing factor: 8 rows (f32), 16 (bf16), 32 (int8 / fp8).
    align = max(8, 32 // itemsize)
    tile_rows = _choose_tile_rows(rows, lane, itemsize, tile_bytes, align)

    # NOTE: the reshape is a free bitcast only for a contiguous row-major x
    # (the common case for projector activations); a non-default layout would
    # trigger an XLA relayout copy upstream of the kernel.
    x2 = x.reshape(rows, lane)

    # Only request aliasing when the caller donates x (x dead after the call);
    # otherwise XLA adds a defensive copy of the operand before the must-alias
    # custom call, which costs a full extra HBM round trip.
    alias = {0: 0} if donate else {}

    out2 = pl.pallas_call(
        _copy_kernel,
        out_shape=jax.ShapeDtypeStruct((rows, lane), x.dtype),
        grid=(pl.cdiv(rows, tile_rows),),
        in_specs=[pl.BlockSpec((tile_rows, lane), lambda i: (i, 0))],
        out_specs=pl.BlockSpec((tile_rows, lane), lambda i: (i, 0)),
        input_output_aliases=alias,
        compiler_params=pltpu.CompilerParams(
            dimension_semantics=("parallel",),
            vmem_limit_bytes=vmem_limit,
        ),
    )(x2)
    return out2.reshape(orig_shape)


def identity_map_pallas_dma(x: jax.Array, *args, **kwargs) -> jax.Array:
    """Explicit Pallas copy of x via a single HBM->HBM DMA (no VMEM buffers)."""
    if x.size == 0:
        return x
    return pl.pallas_call(
        _dma_copy_kernel,
        out_shape=jax.ShapeDtypeStruct(x.shape, x.dtype),
        in_specs=[pl.BlockSpec(memory_space=pl.ANY)],
        out_specs=pl.BlockSpec(memory_space=pl.ANY),
        scratch_shapes=[pltpu.SemaphoreType.DMA(())],
    )(x)


if __name__ == "__main__":
    key = jax.random.PRNGKey(0)
    # Projector-style input: batch=2, seq=8, hidden=32.
    x = jax.random.normal(key, (2, 8, 32), dtype=jnp.float32)

    # Production path: literal no-op (the IdentityMap.forward semantics).
    assert identity_map(x) is x

    # Tiled VMEM copy kernel (benchmark path), lane-dense small shape.
    y = identity_map_pallas(x)
    jax.block_until_ready(y)
    assert y.shape == x.shape and y.dtype == x.dtype
    assert bool(jnp.array_equal(y, x))

    # Multi-step grid + bf16 packing alignment, still a small (128 KiB) input.
    xb = jax.random.normal(jax.random.PRNGKey(0), (64, 1024),
                           dtype=jnp.float32).astype(jnp.bfloat16)
    yb = identity_map_pallas(xb)
    jax.block_until_ready(yb)
    assert yb.shape == xb.shape and yb.dtype == xb.dtype
    assert bool(jnp.array_equal(yb, xb))

    # DMA-only HBM->HBM copy path (no VMEM double buffer).
    yd = identity_map_pallas_dma(x)
    jax.block_until_ready(yd)
    assert bool(jnp.array_equal(yd, x))

    # Non-128-divisible shapes now take the zero-copy identity fallback.
    x_odd = jax.random.normal(jax.random.PRNGKey(0), (2, 3, 5), dtype=jnp.float32)
    y_odd = identity_map_pallas(x_odd)
    assert y_odd is x_odd

    print("KERNEL_OK")
</pallas_src>

<mosaic_0001>
module attributes {stable_mosaic.version = 11 : i64} {
  func.func @_copy_kernel(%arg0: i32, %arg1: memref<1x512xf32, #tpu.memory_space<vmem>>, %arg2: memref<1x512xf32, #tpu.memory_space<vmem>>) attributes {dimension_semantics = [#tpu.dimension_semantics<parallel>], iteration_bounds = array<i64: 1>, scalar_prefetch = 0 : i64, scratch_operands = 0 : i64, tpu.core_type = #tpu.core_type<tc>, window_params = [{transform_indices = @transform_0, window_bounds = array<i64: 1, 512>}, {transform_indices = @transform_1, window_bounds = array<i64: 1, 512>}]} {
    %c0 = arith.constant 0 : index
    %c0_0 = arith.constant 0 : index
    %0 = vector.load %arg1[%c0, %c0_0] : memref<1x512xf32, #tpu.memory_space<vmem>>, vector<1x512xf32>
    %c0_1 = arith.constant 0 : index
    %c0_2 = arith.constant 0 : index
    %1 = vector.load %arg2[%c0_1, %c0_2] : memref<1x512xf32, #tpu.memory_space<vmem>>, vector<1x512xf32>
    tpu.vector_store %arg2[%c0_1, %c0_2], %0 {strides = array<i32>} : memref<1x512xf32, #tpu.memory_space<vmem>>, vector<1x512xf32>,
    return
  }
  func.func @transform_0(%arg0: i32) -> (i32, i32) {
    %c0_i32 = arith.constant 0 : i32
    %c0_i32_0 = arith.constant 0 : i32
    return %arg0, %c0_i32 : i32, i32
  }
  func.func @transform_1(%arg0: i32) -> (i32, i32) {
    %c0_i32 = arith.constant 0 : i32
    %c0_i32_0 = arith.constant 0 : i32
    return %arg0, %c0_i32 : i32, i32
  }
}

</mosaic_0001>

<bundles_post_ra>
// kernel: tpu_custom_call.1
= control target key start
LH: loop header
LB: loop body
LE: loop exit
PB: predicated region body
PF: predicated region fallthrough
CT: control target
= control target key end

     0   :  { %6 = vsyncpa [#allocation3], 0  ;;  %s118_s0 = inlined_call_operand.hbm [shape: f32[1,512], index: 0, kind: input, shape index: {}]   ;;  %s119_s1 = inlined_call_operand.hbm [shape: f32[1,512], index: 1, kind: output, shape index: {}]  }
   0x1   :  { %7 = vsyncpa [#allocation4], 0  ;;  %s13_s8 = sshll.u32 %s118_s0, 4  ;;  %s100_s9 = smov [#allocation2]   ;;  %s14_s8 = int_to_ptr.hbm [resolvable:$true] %s13_s8 }
   0x2   :  { %s15_s10 = sshll.u32 %s100_s9, 4  ;;  %s16_s10 = int_to_ptr.vmem [resolvable:$true] %s15_s10 }
   0x3   :  { %18 = dma.hbm_to_vmem [thread:$0]  %s14_s8, 64, %s16_s10, [#allocation3]  }
   0x4   :  { %96 = dma.done.wait [#allocation3], 64  }
   0x5   :  { %97 = vsyncadd [#allocation3], 4294967232  ;;  %v24_v0 = vlaneseq  ;;  %s101_s11 = smov [#allocation5]   ;;  %s36_s15 = sshll.u32 %s119_s1, 4  ;;  %v23_v1 = vld [vmem:[#allocation2] sm:$0xf]  ;;  %s37_s15 = int_to_ptr.hbm [resolvable:$true] %s36_s15 }
   0x6   :  { %s34_s12 = sshll.u32 %s101_s11, 4  ;;  %s35_s12 = int_to_ptr.vmem [resolvable:$true] %s34_s12 }
   0x7   :  { %vm26_vm0 = vcmp.lt.s32.totalorder %v24_v0, 512 }
   0x8   :  { %28 = vst.msk [vmem:[#allocation5] sm:$0xf] %vm26_vm0, %v23_v1 }
   0x9   :  { %39 = dma.vmem_to_hbm [thread:$0]  %s35_s12, 64, %s37_s15, [#allocation4]  }
   0xa   :  { %98 = dma.done.wait [#allocation4], 64  }
   0xb   :  { %99 = vsyncadd [#allocation4], 4294967232 }
   0xc   :  { %44 = vsyncpa [#allocation3], 1 }
   0xd   :  { %45 = vsyncpa [#allocation4], 1 }

</bundles_post_ra>
